<compile_context>
chip_gen: v5e
topology: v5e:2x2
jax: 0.10.0
libtpu: 0.0.40
codegen_flags: <defaults>
</compile_context>

<pallas_src>
import numpy as np
import jax
import jax.numpy as jnp
from jax.experimental import pallas as pl
from jax.experimental.pallas import tpu as pltpu


# TODO(synk): Transform.operation is abstract in the base class; the identity
#             operation is used here so the masked-apply data path matches the
#             PyTorch forward exactly. Concrete subclasses replace _operation.
def _operation(x):
    return x


def _transform_kernel(mask_ref, x_ref, o_ref):
    """Processes one (1, C, TILE_T) tile of one batch element per grid step."""
    b = pl.program_id(0)

    # Selected batch element: run the augmentation operation on this tile.
    @pl.when(mask_ref[b] != 0)
    def _apply():
        o_ref[...] = _operation(x_ref[...])

    # Unselected batch element: plain clone (copy-through), no op cost.
    @pl.when(mask_ref[b] == 0)
    def _skip():
        o_ref[...] = x_ref[...]


def _round_up(x, m):
    return ((x + m - 1) // m) * m


def _choose_tile_t(n_channels, n_times, vmem_block_budget_bytes=12 * 1024 * 1024):
    """Largest multiple-of-128 time tile whose 4 double-buffered f32 blocks
    (2 input + 2 output) of shape (1, C, tile) fit the VMEM budget."""
    t128 = _round_up(n_times, 128)
    max_tile = vmem_block_budget_bytes // (4 * n_channels * 4)
    max_tile = max(128, (max_tile // 128) * 128)
    return min(t128, max_tile)


def _apply_transform(x3d, mask):
    """x3d: (B, C, T) float32, mask: (B,) int32 -> (B, C, T) float32."""
    B, C, T = x3d.shape
    tile_t = _choose_tile_t(C, T)
    t_padded = _round_up(T, tile_t)
    if t_padded != T:
        # Pad the time axis so every block is lane-dense (multiple of 128) and
        # the grid divides evenly; padded lanes are trimmed before returning.
        x3d = jnp.pad(x3d, ((0, 0), (0, 0), (0, t_padded - T)))
    grid_t = t_padded // tile_t

    block_bytes = C * tile_t * 4
    vmem_limit = min(
        64 * 1024 * 1024,                                  # v7x physical ceiling
        max(16 * 1024 * 1024, 4 * block_bytes + (4 << 20)),  # 4 blocks + headroom
    )

    out = pl.pallas_call(
        _transform_kernel,
        out_shape=jax.ShapeDtypeStruct((B, C, t_padded), jnp.float32),
        grid_spec=pltpu.PrefetchScalarGridSpec(
            num_scalar_prefetch=1,               # per-batch mask lands in SMEM
            grid=(B, grid_t),
            in_specs=[
                pl.BlockSpec((1, C, tile_t), lambda b, t, m: (b, 0, t)),
            ],
            out_specs=pl.BlockSpec((1, C, tile_t), lambda b, t, m: (b, 0, t)),
        ),
        compiler_params=pltpu.CompilerParams(
            dimension_semantics=("parallel", "arbitrary"),
            vmem_limit_bytes=vmem_limit,
        ),
        cost_estimate=pl.CostEstimate(
            flops=0,
            transcendentals=0,
            bytes_accessed=2 * B * C * t_padded * 4,
        ),
    )(mask, x3d)

    if t_padded != T:
        out = out[:, :, :T]
    return out


class PallasTransform:
    """JAX/Pallas equivalent of braindecode's Transform base module."""

    def __init__(self, probability=1.0, random_state=None):
        assert 0.0 <= probability <= 1.0, "probability should be between 0 and 1."
        self._probability = float(probability)
        # Matches check_random_state(random_state) + rng.uniform in PyTorch code.
        self.rng = np.random.RandomState(random_state)

    @property
    def probability(self):
        return self._probability

    def _get_mask(self, batch_size):
        # mask[b] = probability > rng.uniform(), drawn once per batch element
        # on the host with the module's RNG (exactly as the PyTorch reference).
        return (self._probability > self.rng.uniform(size=batch_size)).astype(np.int32)

    def __call__(self, X, y=None):
        X = jnp.asarray(X, dtype=jnp.float32)
        orig_shape = X.shape

        out_X = X
        if out_X.ndim < 3:
            out_X = out_X[None, ...]          # add leading batch dim (as in PyTorch)

        # Kernel works on (B, C, T); EEG inputs are (C, T) or (B, C, T).
        kernel_view = out_X
        squeeze_chan = False
        if kernel_view.ndim == 2:             # original X was 1-D (T,)
            kernel_view = kernel_view[:, None, :]
            squeeze_chan = True

        B = kernel_view.shape[0]

        if y is not None:
            out_y = jnp.asarray(y)
            if out_y.ndim == 0:
                out_y = out_y.reshape(1)
        else:
            out_y = jnp.zeros((B,), dtype=jnp.float32)

        mask = jnp.asarray(self._get_mask(B), dtype=jnp.int32)

        out = _apply_transform(kernel_view, mask)

        if squeeze_chan:
            out = out[:, 0, :]
        out_X = out.reshape(orig_shape)       # reshape_as(X)

        # operation is identity -> out_y is the clone of y (unchanged for the mask).
        if y is not None:
            return out_X, out_y
        return out_X


if __name__ == "__main__":
    key = jax.random.PRNGKey(0)
    k1, k2 = jax.random.split(key)

    # Batched EEG example: (batch=2, channels=4, time=256)
    X = jax.random.normal(k1, (2, 4, 256), dtype=jnp.float32)
    y = jnp.array([0, 1], dtype=jnp.int32)

    tr = PallasTransform(probability=0.5, random_state=0)
    out_X, out_y = tr(X, y)
    out_X = jax.block_until_ready(out_X)

    # Base-class operation is identity -> output must equal a clone of X.
    assert out_X.shape == X.shape
    np.testing.assert_allclose(np.asarray(out_X), np.asarray(X), rtol=0, atol=0)
    np.testing.assert_array_equal(np.asarray(out_y), np.asarray(y))

    # Single example (C, T) with T not a multiple of 128 exercises the implicit
    # batch dim, the lane padding path, and reshape_as(X).
    X2 = jax.random.normal(k2, (4, 200), dtype=jnp.float32)
    out_X2 = jax.block_until_ready(tr(X2))
    assert out_X2.shape == X2.shape
    np.testing.assert_allclose(np.asarray(out_X2), np.asarray(X2), rtol=0, atol=0)

    print("KERNEL_OK")
</pallas_src>

<mosaic_0001>
module attributes {stable_mosaic.version = 11 : i64} {
  func.func @_transform_kernel(%arg0: i32, %arg1: i32, %arg2: memref<2xi32, #tpu.memory_space<smem>>, %arg3: memref<1x4x256xf32, #tpu.memory_space<vmem>>, %arg4: memref<1x4x256xf32, #tpu.memory_space<vmem>>) attributes {dimension_semantics = [#tpu.dimension_semantics<parallel>, #tpu.dimension_semantics<arbitrary>], iteration_bounds = array<i64: 2, 1>, scalar_prefetch = 1 : i64, scratch_operands = 0 : i64, tpu.core_type = #tpu.core_type<tc>, window_params = [{transform_indices = @transform_0, window_bounds = array<i64: 1, 4, 256>}, {transform_indices = @transform_1, window_bounds = array<i64: 1, 4, 256>}]} {
    %0 = arith.index_cast %arg0 : i32 to index
    %1 = memref.load %arg2[%0] : memref<2xi32, #tpu.memory_space<smem>>
    %c0_i32 = arith.constant 0 : i32
    %2 = arith.cmpi ne, %1, %c0_i32 : i32
    %3 = arith.extui %2 : i1 to i32
    %c0_i32_0 = arith.constant 0 : i32
    %4 = arith.cmpi ne, %3, %c0_i32_0 : i32
    scf.if %4 {
      %c0 = arith.constant 0 : index
      %c0_3 = arith.constant 0 : index
      %c0_4 = arith.constant 0 : index
      %10 = vector.load %arg3[%c0, %c0_3, %c0_4] : memref<1x4x256xf32, #tpu.memory_space<vmem>>, vector<1x4x256xf32>
      %c0_5 = arith.constant 0 : index
      %c0_6 = arith.constant 0 : index
      %c0_7 = arith.constant 0 : index
      %11 = vector.load %arg4[%c0_5, %c0_6, %c0_7] : memref<1x4x256xf32, #tpu.memory_space<vmem>>, vector<1x4x256xf32>
      tpu.vector_store %arg4[%c0_5, %c0_6, %c0_7], %10 {strides = array<i32>} : memref<1x4x256xf32, #tpu.memory_space<vmem>>, vector<1x4x256xf32>,
    } else {
    }
    %5 = arith.index_cast %arg0 : i32 to index
    %6 = memref.load %arg2[%5] : memref<2xi32, #tpu.memory_space<smem>>
    %c0_i32_1 = arith.constant 0 : i32
    %7 = arith.cmpi eq, %6, %c0_i32_1 : i32
    %8 = arith.extui %7 : i1 to i32
    %c0_i32_2 = arith.constant 0 : i32
    %9 = arith.cmpi ne, %8, %c0_i32_2 : i32
    scf.if %9 {
      %c0 = arith.constant 0 : index
      %c0_3 = arith.constant 0 : index
      %c0_4 = arith.constant 0 : index
      %10 = vector.load %arg3[%c0, %c0_3, %c0_4] : memref<1x4x256xf32, #tpu.memory_space<vmem>>, vector<1x4x256xf32>
      %c0_5 = arith.constant 0 : index
      %c0_6 = arith.constant 0 : index
      %c0_7 = arith.constant 0 : index
      %11 = vector.load %arg4[%c0_5, %c0_6, %c0_7] : memref<1x4x256xf32, #tpu.memory_space<vmem>>, vector<1x4x256xf32>
      tpu.vector_store %arg4[%c0_5, %c0_6, %c0_7], %10 {strides = array<i32>} : memref<1x4x256xf32, #tpu.memory_space<vmem>>, vector<1x4x256xf32>,
    } else {
    }
    return
  }
  func.func @transform_0(%arg0: i32, %arg1: i32, %arg2: memref<2xi32, #tpu.memory_space<smem>>) -> (i32, i32, i32) {
    %c0_i32 = arith.constant 0 : i32
    %c0_i32_0 = arith.constant 0 : i32
    return %arg0, %c0_i32, %arg1 : i32, i32, i32
  }
  func.func @transform_1(%arg0: i32, %arg1: i32, %arg2: memref<2xi32, #tpu.memory_space<smem>>) -> (i32, i32, i32) {
    %c0_i32 = arith.constant 0 : i32
    %c0_i32_0 = arith.constant 0 : i32
    return %arg0, %c0_i32, %arg1 : i32, i32, i32
  }
}

</mosaic_0001>

<bundles_post_ra>
// kernel: tpu_custom_call.1
= control target key start
LH: loop header
LB: loop body
LE: loop exit
PB: predicated region body
PF: predicated region fallthrough
CT: control target
= control target key end

     0   :  { %s491_s12 = smov [#allocation3]   ;;  %s632_s0 = inlined_call_operand.hbm [shape: s32[2], index: 0, kind: input, shape index: {}]   ;;  %s633_s1 = inlined_call_operand.hbm [shape: f32[2,4,256], index: 1, kind: input, shape index: {}]   ;;  %s634_s2 = inlined_call_operand.hbm [shape: f32[2,4,256], index: 2, kind: output, shape index: {}]  }
   0x1   :  { %s8_s11 = sshll.u32 %s632_s0, 4  ;;  %s9_s11 = int_to_ptr.hbm [resolvable:$true] %s8_s11 }
   0x2   :  { %11 = dma.hbm_to_smem %s9_s11, 16, %s491_s12, [#allocation2] }
   0x3   :  { %457 = dma.done.wait [#allocation2], 16 }
   0x4   :  { %458 = vsyncadd [#allocation2], 4294967280 }
   0x5   :  { %14 = sfence }
   0x6   :  { %15 = vsyncpa [#allocation5], 0 }
   0x7   :  { %17 = vsyncpa [#allocation5 + $0x1], 0 }
   0x8   :  { %18 = vsyncpa [#allocation6], 0 }
   0x9   :  { %20 = vsyncpa [#allocation6 + $0x1], 0  ;;  %s510_s13 = smov 0   ;;  %s512_s14 = smov 0  }
   0xa   :  { %s514_s15 = smov 0   ;;  %s516_s16 = smov 0  }
   0xb   :  { %s518_s17 = smov 0   ;;  %s520_s0 = smov 0  }
   0xc LB: > { %s281_s18 = sadd.s32 4294967295, %s489_s0   ;;  %s282_s19 = sadd.s32 4294967294, %s489_s0   ;;  %s489_s0 = sphi %s520_s0, %s26_s0   ;;  %s485_s17 = sphi %s518_s17, %s643_s17   ;;  %s481_s16 = sphi %s516_s16, %s642_s16   ;;  %s477_s15 = sphi %s514_s15, %s641_s15   ;;  %s473_s14 = sphi %s512_s14, %s640_s14   ;;  %s469_s13 = sphi %s510_s13, %s639_s13  }
   0xd   : > { %s38_s20 = sadd.s32 1, %s485_s17  ;;  %s47_s21 = sadd.s32 1, %s477_s15 }
   0xe   : > { %p40_p0 = scmp.ge.s32.totalorder %s38_s20, 2  ;;  %p54_p1 = scmp.ne.s32.totalorder %s477_s15, %s473_s14 }
   0xf   : > { %p55_p2 = scmp.eq.s32.totalorder %s489_s0, 0  ;;  %p60_p3 = scmp.ne.s32.totalorder %s473_s14, %s469_s13 }
  0x10   : > { %s645_s20 = smov (%p40_p0, %s38_s20), 0  ;;  %p61_p5 = scmp.eq.s32.totalorder %s281_s18, 0 }
  0x11   : > { %p551_p4 = por %p55_p2, %p54_p1  ;;  %s42_s23 = ssub.s32 %s485_s17, %s645_s20 }
  0x12   : > { %p86_p6 = scmp.eq.s32.totalorder %s281_s18, 1  ;;  %p45_p7 = scmp.eq.s32.totalorder %s42_s23, 0 }
  0x13   : > { %p557_p8 = por %p61_p5, %p60_p3  ;;  %p92_p10 = scmp.eq.s32.totalorder %s282_s19, 1 }
  0x14   : > { %p561_p9 = por %p86_p6, %p54_p1  ;;  %p284_p12 = scmp.ge.s32.totalorder %s489_s0, 2 }
  0x15   : > { %s566_s26 = scalar_select %p45_p7, %s477_s15, %s47_s21  }
  0x16   : > { %p568_p11 = por %p92_p10, %p60_p3  ;;  %p312_p13 = scmp.lt.s32.totalorder %s489_s0, 2 }
  0x17   : > { %s112_s28 = sand.u32 1, %s477_s15   ;;  %s298_s30 = sshll.u32 %s485_s17, 3 }
  0x18   : > { %s285_s29 = sshll.u32 %s112_s28, 3  ;;  %s123_s5 = scalar_lea.hbm %s633_s1, %s298_s30 }
  0x19   : > { %s116_s6 = scalar_lea.vmem [#allocation4], %s285_s29  ;;  %s125_s8 = sshll.u32 %s123_s5, 4  ;;  %s126_s8 = int_to_ptr.hbm [resolvable:$true] %s125_s8 }
  0x1a   : > { %s127_s7 = sshll.u32 %s116_s6, 4  ;;  %p305_p0 = pnand %p312_p13, %p551_p4  ;;  %s128_s7 = int_to_ptr.vmem [resolvable:$true] %s127_s7 }
  0x1b   : > { %p288_p1 = scmp.ge.s32.totalorder %s489_s0, 1  ;;  %p132_p2 = scmp.lt.s32.totalorder %s489_s0, 3 }
  0x1c   : > { %s113_s9 = scalar_lea.sflag [#allocation5], %s112_s28 }
  0x1d   : > { %307 = dma.hbm_to_vmem [thread:$0]  (!%p305_p0), %s126_s8, 128, %s128_s7, %s113_s9  }
  0x1e   : > { %p133_p3 = pnand %p288_p1, %p132_p2 }
  0x1f   : > { %s584_s10 = sand.u32 (!%p133_p3), 1, %s473_s14  }
  0x20   : > { %136 = sbr.rel (%p133_p3) target bundleno = 83 (0x53), region = 24  ;;  %s289_s11 = sshll.u32 (!%p133_p3), %s584_s10, 3 }
  0x21   : > { %s139_s12 = scalar_lea.sflag (!%p133_p3), [#allocation5], %s584_s10  ;;  %s142_s18 = scalar_lea.vmem (!%p133_p3), [#allocation4], %s289_s11 }
  0x25   : > { %460 = dma.done.wait (%p557_p8), %s139_s12, 128  }
  0x26   : > { %462 = vsyncadd (%p557_p8), %s139_s12, 4294967168  ;;  %s164_s19 = sld [smem:[#allocation3 + %s481_s16]]  ;;  %s161_s21 = scalar_lea.vmem [#allocation7], %s289_s11 }
  0x2c   : > { %p291_p4 = scmp.eq.s32.totalorder %s164_s19, 0 }
  0x2e   : > { %168 = sbr.rel (%p291_p4) target bundleno = 53 (0x35), region = 32 }
  0x33   : > { %v169_v0 = vld [vmem:[%s142_s18] sm:$0xff] }
  0x34   : > { %170 = vst [vmem:[%s161_s21] sm:$0xff] %v169_v0 }
  0x35 PF: > { %s171_s22 = sld [smem:[#allocation3 + %s481_s16]] }
  0x3b   : > { %p292_p5 = scmp.ne.s32.totalorder %s171_s22, 0 }
  0x3d   : > { %175 = sbr.rel (%p292_p5) target bundleno = 68 (0x44), region = 36 }
  0x42   : > { %v176_v1 = vld [vmem:[%s142_s18] sm:$0xff] }
  0x43   : > { %177 = vst [vmem:[%s161_s21] sm:$0xff] %v176_v1 }
  0x44 PF: > { %s299_s23 = sshll.u32 %s481_s16, 3  ;;  %s194_s30 = sshll.u32 %s161_s21, 4  ;;  %s195_s30 = int_to_ptr.vmem [resolvable:$true] %s194_s30 }
  0x45   : > { %s192_s29 = scalar_lea.hbm %s634_s2, %s299_s23  ;;  %s179_s4 = scalar_lea.sflag [#allocation6], %s584_s10 }
  0x46   : > { %s196_s3 = sshll.u32 %s192_s29, 4  ;;  %s425_s16 = scalar_lea.hbm %s634_s2, 16  ;;  %s197_s3 = int_to_ptr.hbm [resolvable:$true] %s196_s3 }
  0x47   : > { %s419_s5 = sshra.s32 %s197_s3, 4  ;;  %s420_s5 = int_to_ptr.hbm [resolvable:$true] %s419_s5 }
  0x48   : > { %s421_s6 = scalar_lea.hbm %s420_s5, 8  ;;  %p426_p10 = scmp.lt.s32.totalorder %s420_s5, %s634_s2 }
  0x49   : > { %p422_p6 = scmp.ne.s32.totalorder %s420_s5, %s421_s6  ;;  %p427_p13 = scmp.lt.s32.totalorder %s425_s16, %s421_s6 }
  0x4b   : > { %p423_p7 = pnand %p422_p6, %p561_p9  ;;  %p428_p0 = por %p427_p13, %p426_p10 }
  0x4d   : > { %p424_p8 = pneg %p423_p7 }
  0x4f   : > { %p429_p1 = pnand %p428_p0, %p424_p8 }
  0x51   : > { %432 = shalt.err (!%p429_p1)
}
  0x52   : > { %302 = dma.vmem_to_hbm [thread:$0]  (%p561_p9), %s195_s30, 128, %s197_s3, %s179_s4  }
  0x53 PF: > { %s208_s10 = sand.u32 1, %s469_s13   ;;  %p309_p2 = pnand %p284_p12, %p568_p11 }
  0x54   : > { %s209_s12 = scalar_lea.sflag [#allocation6], %s208_s10 }
  0x55   : > { %p310_p3 = pneg %p309_p2 }
  0x57   : > { %464 = dma.done.wait (%p310_p3), %s209_s12, 128  }
  0x58   : > { %466 = vsyncadd (%p310_p3), %s209_s12, 4294967168  ;;  %s26_s0 = sadd.s32 1, %s489_s0   ;;  %s639_s13 = smov %s473_s14 }
  0x59   : > { %p23_p4 = scmp.ge.s32.totalorder %s26_s0, 4   ;;  %s640_s14 = smov %s477_s15 }
  0x5a   : > { %s641_s15 = smov %s566_s26  ;;  %s642_s16 = smov %s485_s17 }
  0x5b   : > { %s643_s17 = smov %s645_s20  ;;  %25 = sbr.rel (!%p23_p4) target bundleno = 12 (0xc), region = 77 }
  0x60   :  { %215 = vsyncpa [#allocation5], 1 }
  0x61   :  { %217 = vsyncpa [#allocation5 + $0x1], 1 }
  0x62   :  { %218 = vsyncpa [#allocation6], 1 }
  0x63   :  { %220 = vsyncpa [#allocation6 + $0x1], 1 }

</bundles_post_ra>
